<compile_context>
chip_gen: v7x
topology: tpu7x:2x2x1
jax: 0.10.0
libtpu: 0.0.40
codegen_flags: <defaults>
</compile_context>

<pallas_src>
import functools

import jax
import jax.numpy as jnp
from jax import lax
from jax.experimental import pallas as pl
from jax.experimental.pallas import tpu as pltpu

_LANE = 128   # lane width
_SUB = 8      # f32 sublanes per vreg


# ----------------------------------------------------------------------------
# small helpers
# ----------------------------------------------------------------------------
def _round_up(x, m):
    return ((x + m - 1) // m) * m


def _pad2(x, rows, cols):
    return jnp.pad(x, ((0, rows - x.shape[0]), (0, cols - x.shape[1])))


def _pad1(x, n):
    return jnp.pad(x, (0, n - x.shape[0]))


def _full_spec(shape):
    # block == full array -> (8,128) divisibility rule does not apply
    return pl.BlockSpec(shape, lambda: tuple(0 for _ in shape))


# ----------------------------------------------------------------------------
# fused whole-forward kernel (small / medium graphs: A fits in VMEM)
# ----------------------------------------------------------------------------
def _skipgnn_fused_kernel(x_ref, a_ref, w0_ref, b0_ref, wm_ref, bm_ref,
                          wl_ref, bl_ref, wp_ref, bp_ref, out_ref, h_ref,
                          *, n_mid):
    cdt = w0_ref.dtype   # matmul/compute dtype (bf16); accumulation is f32

    # --- layer 0: h = relu(A @ (X @ W0) + b0) -------------------------------
    xw = jnp.dot(x_ref[...], w0_ref[...], preferred_element_type=jnp.float32)
    g = jnp.dot(a_ref[...], xw.astype(cdt), preferred_element_type=jnp.float32)
    h_ref[...] = jnp.maximum(g + b0_ref[...], 0.0)

    # --- middle layers: h = relu(A @ (h @ W_l) + b_l) + h  (h stays in VMEM) -
    def body(l, carry):
        h = h_ref[...]
        xw = jnp.dot(h.astype(cdt), wm_ref[l],
                     preferred_element_type=jnp.float32)
        g = jnp.dot(a_ref[...], xw.astype(cdt),
                    preferred_element_type=jnp.float32)
        g = jnp.maximum(g + bm_ref[l][0:1, :], 0.0)
        h_ref[...] = g + h
        return carry

    lax.fori_loop(0, n_mid, body, 0, unroll=(n_mid <= 8))

    # --- last GCN layer: no relu, no residual -------------------------------
    h = h_ref[...]
    xw = jnp.dot(h.astype(cdt), wl_ref[...], preferred_element_type=jnp.float32)
    g = jnp.dot(a_ref[...], xw.astype(cdt), preferred_element_type=jnp.float32)
    g = g + bl_ref[...]

    # --- final MLP head ------------------------------------------------------
    o = jnp.dot(g.astype(cdt), wp_ref[...], preferred_element_type=jnp.float32)
    out_ref[...] = (o + bp_ref[...]).astype(out_ref.dtype)


def _forward_fused(X, A, params, compute_dtype):
    N, fin = X.shape
    hid = params["conv_w"][0].shape[1]
    ncls = params["mlp_w"].shape[1]
    n_layers = len(params["conv_w"])
    n_mid = n_layers - 2

    Np = _round_up(N, _LANE)
    Fip = _round_up(fin, _LANE)
    Fp = _round_up(hid, _LANE)
    Cp = _round_up(ncls, _LANE)

    Xp = _pad2(X, Np, Fip).astype(compute_dtype)
    Ap = _pad2(A, Np, Np).astype(compute_dtype)

    W0 = _pad2(params["conv_w"][0], Fip, Fp).astype(compute_dtype)
    b0 = _pad1(params["conv_b"][0], Fp).reshape(1, Fp).astype(jnp.float32)

    if n_mid > 0:
        Wm = jnp.stack([_pad2(w, Fp, Fp) for w in params["conv_w"][1:-1]])
        bm = jnp.stack([_pad1(b, Fp) for b in params["conv_b"][1:-1]])
    else:  # dummy (never read: fori_loop has zero trips)
        Wm = jnp.zeros((1, Fp, Fp), jnp.float32)
        bm = jnp.zeros((1, Fp), jnp.float32)
    Wm = Wm.astype(compute_dtype)
    # replicate bias across 8 sublanes so each dynamic-index slice is a clean
    # (8,128) tile
    bm = jnp.tile(bm.astype(jnp.float32)[:, None, :], (1, _SUB, 1))

    Wl = _pad2(params["conv_w"][-1], Fp, Fp).astype(compute_dtype)
    bl = _pad1(params["conv_b"][-1], Fp).reshape(1, Fp).astype(jnp.float32)
    Wp = _pad2(params["mlp_w"], Fp, Cp).astype(compute_dtype)
    bp = _pad1(params["mlp_b"], Cp).reshape(1, Cp).astype(jnp.float32)

    inputs = (Xp, Ap, W0, b0, Wm, bm, Wl, bl, Wp, bp)

    flops = (2 * Np * Fip * Fp                     # X @ W0
             + 2 * n_layers * Np * Np * Fp         # A @ (.) per GCN layer
             + 2 * (n_layers - 1) * Np * Fp * Fp   # h @ W_l
             + 2 * Np * Fp * Cp)                   # MLP head
    bytes_accessed = (sum(int(z.size) * int(z.dtype.itemsize) for z in inputs)
                      + Np * Cp * 4)

    out = pl.pallas_call(
        functools.partial(_skipgnn_fused_kernel, n_mid=n_mid),
        out_shape=jax.ShapeDtypeStruct((Np, Cp), jnp.float32),
        in_specs=[_full_spec(z.shape) for z in inputs],
        out_specs=_full_spec((Np, Cp)),
        scratch_shapes=[pltpu.VMEM((Np, Fp), jnp.float32)],  # resident h
        cost_estimate=pl.CostEstimate(flops=flops, transcendentals=0,
                                      bytes_accessed=bytes_accessed),
    )(*inputs)
    return out[:N, :ncls]


# ----------------------------------------------------------------------------
# tiled per-layer path (large graphs: A does not fit in VMEM)
# ----------------------------------------------------------------------------
def _xw_kernel(x_ref, w_ref, out_ref):
    out_ref[...] = jnp.dot(x_ref[...], w_ref[...],
                           preferred_element_type=jnp.float32
                           ).astype(out_ref.dtype)


def _linear_kernel(x_ref, w_ref, b_ref, out_ref):
    h = jnp.dot(x_ref[...], w_ref[...], preferred_element_type=jnp.float32)
    out_ref[...] = (h + b_ref[...]).astype(out_ref.dtype)


def _spmm_kernel(a_ref, h_ref, b_ref, out_ref, acc_ref, *, apply_relu):
    """out = [relu](A @ H + b), accumulated over the k (A-column) grid axis."""
    @pl.when(pl.program_id(1) == 0)
    def _init():
        acc_ref[...] = jnp.zeros_like(acc_ref)

    acc_ref[...] += jnp.dot(a_ref[...], h_ref[...],
                            preferred_element_type=jnp.float32)

    @pl.when(pl.program_id(1) == pl.num_programs(1) - 1)
    def _finalize():
        r = acc_ref[...] + b_ref[...]
        if apply_relu:
            r = jnp.maximum(r, 0.0)
        out_ref[...] = r.astype(out_ref.dtype)


def _spmm_res_kernel(a_ref, h_ref, b_ref, res_ref, out_ref, acc_ref):
    """out = relu(A @ H + b) + residual (fused middle-layer finalize)."""
    @pl.when(pl.program_id(1) == 0)
    def _init():
        acc_ref[...] = jnp.zeros_like(acc_ref)

    acc_ref[...] += jnp.dot(a_ref[...], h_ref[...],
                            preferred_element_type=jnp.float32)

    @pl.when(pl.program_id(1) == pl.num_programs(1) - 1)
    def _finalize():
        r = jnp.maximum(acc_ref[...] + b_ref[...], 0.0)
        r = r + res_ref[...].astype(jnp.float32)
        out_ref[...] = r.astype(out_ref.dtype)


def _tiled_gcn_layer(h_in, A, W, b, *, apply_relu, add_residual, tm, tk,
                     out_dtype):
    Np = A.shape[0]
    f_in = h_in.shape[1]
    f_out = W.shape[1]

    # ---- H = h_in @ W  (row-tiled) ------------------------------------------
    H = pl.pallas_call(
        _xw_kernel,
        out_shape=jax.ShapeDtypeStruct((Np, f_out), h_in.dtype),
        grid=(Np // tm,),
        in_specs=[pl.BlockSpec((tm, f_in), lambda i: (i, 0)),
                  pl.BlockSpec((f_in, f_out), lambda i: (0, 0))],
        out_specs=pl.BlockSpec((tm, f_out), lambda i: (i, 0)),
        compiler_params=pltpu.CompilerParams(
            dimension_semantics=("parallel",)),
    )(h_in, W)

    # ---- out = act(A @ H + b) [+ h_in]  (i, k) grid, f32 accumulator --------
    b2 = b.reshape(1, f_out).astype(jnp.float32)
    in_specs = [pl.BlockSpec((tm, tk), lambda i, k: (i, k)),      # A tile
                pl.BlockSpec((tk, f_out), lambda i, k: (k, 0)),   # H tile
                pl.BlockSpec((1, f_out), lambda i, k: (0, 0))]    # bias (once)
    args = [A, H, b2]
    if add_residual:
        # residual block index is constant in k -> DMA'd once per row tile
        in_specs.append(pl.BlockSpec((tm, f_out), lambda i, k: (i, 0)))
        args.append(h_in)
        kernel = _spmm_res_kernel
    else:
        kernel = functools.partial(_spmm_kernel, apply_relu=apply_relu)

    flops = 2 * Np * Np * f_out
    bytes_accessed = (int(A.size) * int(A.dtype.itemsize)
                      + int(H.size) * int(H.dtype.itemsize)
                      + Np * f_out * jnp.dtype(out_dtype).itemsize)

    return pl.pallas_call(
        kernel,
        out_shape=jax.ShapeDtypeStruct((Np, f_out), out_dtype),
        grid=(Np // tm, Np // tk),
        in_specs=in_specs,
        out_specs=pl.BlockSpec((tm, f_out), lambda i, k: (i, 0)),
        scratch_shapes=[pltpu.VMEM((tm, f_out), jnp.float32)],
        compiler_params=pltpu.CompilerParams(
            dimension_semantics=("parallel", "arbitrary")),
        cost_estimate=pl.CostEstimate(flops=flops, transcendentals=0,
                                      bytes_accessed=bytes_accessed),
    )(*args)


def _tiled_linear(h, W, b, tm, out_dtype):
    Np, f_in = h.shape
    f_out = W.shape[1]
    b2 = b.reshape(1, f_out).astype(jnp.float32)
    return pl.pallas_call(
        _linear_kernel,
        out_shape=jax.ShapeDtypeStruct((Np, f_out), out_dtype),
        grid=(Np // tm,),
        in_specs=[pl.BlockSpec((tm, f_in), lambda i: (i, 0)),
                  pl.BlockSpec((f_in, f_out), lambda i: (0, 0)),
                  pl.BlockSpec((1, f_out), lambda i: (0, 0))],
        out_specs=pl.BlockSpec((tm, f_out), lambda i: (i, 0)),
        compiler_params=pltpu.CompilerParams(
            dimension_semantics=("parallel",)),
    )(h, W, b2)


def _forward_tiled(X, A, params, compute_dtype, tm=256, tk=512):
    N, fin = X.shape
    hid = params["conv_w"][0].shape[1]
    ncls = params["mlp_w"].shape[1]
    n_layers = len(params["conv_w"])

    Np = _round_up(N, max(tm, tk))
    Fip = _round_up(fin, _LANE)
    Fp = _round_up(hid, _LANE)
    Cp = _round_up(ncls, _LANE)

    Xp = _pad2(X, Np, Fip).astype(compute_dtype)
    Ap = _pad2(A, Np, Np).astype(compute_dtype)

    W0 = _pad2(params["conv_w"][0], Fip, Fp).astype(compute_dtype)
    b0 = _pad1(params["conv_b"][0], Fp)
    h = _tiled_gcn_layer(Xp, Ap, W0, b0, apply_relu=True, add_residual=False,
                         tm=tm, tk=tk, out_dtype=compute_dtype)

    for l in range(1, n_layers - 1):
        Wl = _pad2(params["conv_w"][l], Fp, Fp).astype(compute_dtype)
        bl = _pad1(params["conv_b"][l], Fp)
        h = _tiled_gcn_layer(h, Ap, Wl, bl, apply_relu=True, add_residual=True,
                             tm=tm, tk=tk, out_dtype=compute_dtype)

    Wl = _pad2(params["conv_w"][-1], Fp, Fp).astype(compute_dtype)
    bl = _pad1(params["conv_b"][-1], Fp)
    h = _tiled_gcn_layer(h, Ap, Wl, bl, apply_relu=False, add_residual=False,
                         tm=tm, tk=tk, out_dtype=compute_dtype)

    Wp = _pad2(params["mlp_w"], Fp, Cp).astype(compute_dtype)
    bp = _pad1(params["mlp_b"], Cp)
    out = _tiled_linear(h, Wp, bp, tm, jnp.float32)
    return out[:N, :ncls]


# ----------------------------------------------------------------------------
# public forward: dispatch fused vs tiled
# ----------------------------------------------------------------------------
def skipgnn_forward(X, A, params, *, compute_dtype=jnp.bfloat16, mode="auto"):
    Np = _round_up(X.shape[0], _LANE)
    use_fused = (mode == "fused") or (mode == "auto" and Np <= 1024)
    if use_fused:
        return _forward_fused(X, A, params, compute_dtype)
    return _forward_tiled(X, A, params, compute_dtype)


# ----------------------------------------------------------------------------
# deterministic parameter init (Xavier-uniform weights, zero biases)
# ----------------------------------------------------------------------------
def init_params(key, input_dim, hid_dim, n_classes, n_layers,
                dtype=jnp.float32):
    def xavier(k, fan_in, fan_out):
        bound = jnp.sqrt(6.0 / (fan_in + fan_out))
        # stored pre-transposed: shape (fan_in, fan_out)
        return jax.random.uniform(k, (fan_in, fan_out), dtype=dtype,
                                  minval=-bound, maxval=bound)

    keys = jax.random.split(key, n_layers + 1)
    conv_w = [xavier(keys[0], input_dim, hid_dim)]
    conv_w += [xavier(keys[i], hid_dim, hid_dim) for i in range(1, n_layers)]
    conv_b = [jnp.zeros((hid_dim,), dtype) for _ in range(n_layers)]
    mlp_w = xavier(keys[n_layers], hid_dim, n_classes)
    mlp_b = jnp.zeros((n_classes,), dtype)
    return {"conv_w": conv_w, "conv_b": conv_b, "mlp_w": mlp_w, "mlp_b": mlp_b}


# ----------------------------------------------------------------------------
# pure-JAX f32 reference
# ----------------------------------------------------------------------------
def skipgnn_reference(X, A, params):
    ws, bs = params["conv_w"], params["conv_b"]
    h = jnp.maximum(A @ (X @ ws[0]) + bs[0], 0.0)
    for l in range(1, len(ws) - 1):
        h = jnp.maximum(A @ (h @ ws[l]) + bs[l], 0.0) + h
    h = A @ (h @ ws[-1]) + bs[-1]
    return h @ params["mlp_w"] + params["mlp_b"]


def _make_graph(key, n):
    ka, = jax.random.split(key, 1)
    a = (jax.random.uniform(ka, (n, n)) < 0.1).astype(jnp.float32)
    a = a + jnp.eye(n, dtype=jnp.float32)
    return a / jnp.sum(a, axis=1, keepdims=True)   # row-normalized + self loops


if __name__ == "__main__":
    key = jax.random.PRNGKey(0)
    k1, k2, k3, k4, k5, k6, k7, k8 = jax.random.split(key, 8)

    # -------- test 1: small graph -> fully fused single-kernel path ---------
    N, Fin, hid, ncls, L = 64, 32, 32, 8, 3
    X = jax.random.normal(k1, (N, Fin), dtype=jnp.float32)
    A = _make_graph(k2, N)
    params = init_params(k3, Fin, hid, ncls, L)
    # non-zero biases so the bias path is actually exercised by the check
    bkeys = jax.random.split(k4, L + 1)
    params["conv_b"] = [0.1 * jax.random.normal(bkeys[i], (hid,), jnp.float32)
                        for i in range(L)]
    params["mlp_b"] = 0.1 * jax.random.normal(bkeys[L], (ncls,), jnp.float32)

    out = jax.block_until_ready(skipgnn_forward(X, A, params))
    ref = skipgnn_reference(X, A, params)
    assert out.shape == (N, ncls)
    assert jnp.allclose(out, ref, atol=7.5e-2, rtol=7.5e-2), (
        "fused mismatch, max err = %f" % float(jnp.max(jnp.abs(out - ref))))

    # -------- test 2: larger graph -> tiled per-layer path ------------------
    N2, Fin2, hid2, ncls2, L2 = 300, 48, 32, 8, 4
    X2 = jax.random.normal(k5, (N2, Fin2), dtype=jnp.float32)
    A2 = _make_graph(k6, N2)
    params2 = init_params(k7, Fin2, hid2, ncls2, L2)
    bkeys2 = jax.random.split(k8, L2 + 1)
    params2["conv_b"] = [0.1 * jax.random.normal(bkeys2[i], (hid2,),
                                                 jnp.float32)
                         for i in range(L2)]
    params2["mlp_b"] = 0.1 * jax.random.normal(bkeys2[L2], (ncls2,),
                                               jnp.float32)

    out2 = jax.block_until_ready(skipgnn_forward(X2, A2, params2,
                                                 mode="tiled"))
    ref2 = skipgnn_reference(X2, A2, params2)
    assert out2.shape == (N2, ncls2)
    assert jnp.allclose(out2, ref2, atol=7.5e-2, rtol=7.5e-2), (
        "tiled mismatch, max err = %f" % float(jnp.max(jnp.abs(out2 - ref2))))

    print("KERNEL_OK")
</pallas_src>

<mosaic_0001>
module attributes {stable_mosaic.version = 11 : i64} {
  func.func @_skipgnn_fused_kernel(%arg0: memref<128x128xbf16, #tpu.memory_space<vmem>>, %arg1: memref<128x128xbf16, #tpu.memory_space<vmem>>, %arg2: memref<128x128xbf16, #tpu.memory_space<vmem>>, %arg3: memref<1x128xf32, #tpu.memory_space<vmem>>, %arg4: memref<1x128x128xbf16, #tpu.memory_space<vmem>>, %arg5: memref<1x8x128xf32, #tpu.memory_space<vmem>>, %arg6: memref<128x128xbf16, #tpu.memory_space<vmem>>, %arg7: memref<1x128xf32, #tpu.memory_space<vmem>>, %arg8: memref<128x128xbf16, #tpu.memory_space<vmem>>, %arg9: memref<1x128xf32, #tpu.memory_space<vmem>>, %arg10: memref<128x128xf32, #tpu.memory_space<vmem>>, %arg11: memref<128x128xf32, #tpu.memory_space<vmem>>) attributes {dimension_semantics = [], scalar_prefetch = 0 : i64, scratch_operands = 1 : i64, tpu.core_type = #tpu.core_type<tc>} {
    %c0 = arith.constant 0 : index
    %c0_0 = arith.constant 0 : index
    %0 = vector.load %arg0[%c0, %c0_0] : memref<128x128xbf16, #tpu.memory_space<vmem>>, vector<128x128xbf16>
    %c0_1 = arith.constant 0 : index
    %c0_2 = arith.constant 0 : index
    %1 = vector.load %arg2[%c0_1, %c0_2] : memref<128x128xbf16, #tpu.memory_space<vmem>>, vector<128x128xbf16>
    %cst = arith.constant dense<0.000000e+00> : vector<128x128xf32>
    %2 = tpu.matmul %0, %1, %cst {dimension_numbers = #tpu.dot_dimension_numbers<[1], [0], [0], [1], [0, 0, 1, 1], [], []>} : vector<128x128xbf16>, vector<128x128xbf16>, vector<128x128xf32> -> vector<128x128xf32>
    %c0_3 = arith.constant 0 : index
    %c0_4 = arith.constant 0 : index
    %3 = vector.load %arg1[%c0_3, %c0_4] : memref<128x128xbf16, #tpu.memory_space<vmem>>, vector<128x128xbf16>
    %4 = arith.truncf %2 : vector<128x128xf32> to vector<128x128xbf16>
    %cst_5 = arith.constant dense<0.000000e+00> : vector<128x128xf32>
    %5 = tpu.matmul %3, %4, %cst_5 {dimension_numbers = #tpu.dot_dimension_numbers<[1], [0], [0], [1], [0, 0, 1, 1], [], []>} : vector<128x128xbf16>, vector<128x128xbf16>, vector<128x128xf32> -> vector<128x128xf32>
    %c0_6 = arith.constant 0 : index
    %c0_7 = arith.constant 0 : index
    %6 = vector.load %arg3[%c0_6, %c0_7] : memref<1x128xf32, #tpu.memory_space<vmem>>, vector<1x128xf32>
    %7 = vector.broadcast %6 : vector<1x128xf32> to vector<128x128xf32>
    %8 = arith.addf %5, %7 : vector<128x128xf32>
    %cst_8 = arith.constant 0.000000e+00 : f32
    %9 = vector.broadcast %cst_8 : f32 to vector<128x128xf32>
    %10 = arith.maximumf %8, %9 : vector<128x128xf32>
    %c0_9 = arith.constant 0 : index
    %c0_10 = arith.constant 0 : index
    %11 = vector.load %arg11[%c0_9, %c0_10] : memref<128x128xf32, #tpu.memory_space<vmem>>, vector<128x128xf32>
    tpu.vector_store %arg11[%c0_9, %c0_10], %10 {strides = array<i32>} : memref<128x128xf32, #tpu.memory_space<vmem>>, vector<128x128xf32>,
    %c0_i32 = arith.constant 0 : i32
    %c0_11 = arith.constant 0 : index
    %c0_12 = arith.constant 0 : index
    %12 = vector.load %arg11[%c0_11, %c0_12] : memref<128x128xf32, #tpu.memory_space<vmem>>, vector<128x128xf32>
    %13 = arith.truncf %12 : vector<128x128xf32> to vector<128x128xbf16>
    %14 = arith.index_cast %c0_i32 : i32 to index
    %c0_13 = arith.constant 0 : index
    %c0_14 = arith.constant 0 : index
    %15 = vector.load %arg4[%14, %c0_13, %c0_14] : memref<1x128x128xbf16, #tpu.memory_space<vmem>>, vector<1x128x128xbf16>
    %16 = vector.shape_cast %15 : vector<1x128x128xbf16> to vector<128x128xbf16>
    %cst_15 = arith.constant dense<0.000000e+00> : vector<128x128xf32>
    %17 = tpu.matmul %13, %16, %cst_15 {dimension_numbers = #tpu.dot_dimension_numbers<[1], [0], [0], [1], [0, 0, 1, 1], [], []>} : vector<128x128xbf16>, vector<128x128xbf16>, vector<128x128xf32> -> vector<128x128xf32>
    %c0_16 = arith.constant 0 : index
    %c0_17 = arith.constant 0 : index
    %18 = vector.load %arg1[%c0_16, %c0_17] : memref<128x128xbf16, #tpu.memory_space<vmem>>, vector<128x128xbf16>
    %19 = arith.truncf %17 : vector<128x128xf32> to vector<128x128xbf16>
    %cst_18 = arith.constant dense<0.000000e+00> : vector<128x128xf32>
    %20 = tpu.matmul %18, %19, %cst_18 {dimension_numbers = #tpu.dot_dimension_numbers<[1], [0], [0], [1], [0, 0, 1, 1], [], []>} : vector<128x128xbf16>, vector<128x128xbf16>, vector<128x128xf32> -> vector<128x128xf32>
    %21 = arith.index_cast %c0_i32 : i32 to index
    %c0_19 = arith.constant 0 : index
    %c0_20 = arith.constant 0 : index
    %22 = vector.load %arg5[%21, %c0_19, %c0_20] : memref<1x8x128xf32, #tpu.memory_space<vmem>>, vector<1x8x128xf32>
    %23 = vector.shape_cast %22 : vector<1x8x128xf32> to vector<8x128xf32>
    %24 = vector.extract_strided_slice %23 {offsets = [0, 0], sizes = [1, 128], strides = [1, 1]} : vector<8x128xf32> to vector<1x128xf32>
    %25 = vector.broadcast %24 : vector<1x128xf32> to vector<128x128xf32>
    %26 = arith.addf %20, %25 : vector<128x128xf32>
    %cst_21 = arith.constant 0.000000e+00 : f32
    %27 = vector.broadcast %cst_21 : f32 to vector<128x128xf32>
    %28 = arith.maximumf %26, %27 : vector<128x128xf32>
    %29 = arith.addf %28, %12 : vector<128x128xf32>
    %c0_22 = arith.constant 0 : index
    %c0_23 = arith.constant 0 : index
    %30 = vector.load %arg11[%c0_22, %c0_23] : memref<128x128xf32, #tpu.memory_space<vmem>>, vector<128x128xf32>
    tpu.vector_store %arg11[%c0_22, %c0_23], %29 {strides = array<i32>} : memref<128x128xf32, #tpu.memory_space<vmem>>, vector<128x128xf32>,
    %c1_i32 = arith.constant 1 : i32
    %c0_24 = arith.constant 0 : index
    %c0_25 = arith.constant 0 : index
    %31 = vector.load %arg11[%c0_24, %c0_25] : memref<128x128xf32, #tpu.memory_space<vmem>>, vector<128x128xf32>
    %32 = arith.truncf %31 : vector<128x128xf32> to vector<128x128xbf16>
    %c0_26 = arith.constant 0 : index
    %c0_27 = arith.constant 0 : index
    %33 = vector.load %arg6[%c0_26, %c0_27] : memref<128x128xbf16, #tpu.memory_space<vmem>>, vector<128x128xbf16>
    %cst_28 = arith.constant dense<0.000000e+00> : vector<128x128xf32>
    %34 = tpu.matmul %32, %33, %cst_28 {dimension_numbers = #tpu.dot_dimension_numbers<[1], [0], [0], [1], [0, 0, 1, 1], [], []>} : vector<128x128xbf16>, vector<128x128xbf16>, vector<128x128xf32> -> vector<128x128xf32>
    %c0_29 = arith.constant 0 : index
    %c0_30 = arith.constant 0 : index
    %35 = vector.load %arg1[%c0_29, %c0_30] : memref<128x128xbf16, #tpu.memory_space<vmem>>, vector<128x128xbf16>
    %36 = arith.truncf %34 : vector<128x128xf32> to vector<128x128xbf16>
    %cst_31 = arith.constant dense<0.000000e+00> : vector<128x128xf32>
    %37 = tpu.matmul %35, %36, %cst_31 {dimension_numbers = #tpu.dot_dimension_numbers<[1], [0], [0], [1], [0, 0, 1, 1], [], []>} : vector<128x128xbf16>, vector<128x128xbf16>, vector<128x128xf32> -> vector<128x128xf32>
    %c0_32 = arith.constant 0 : index
    %c0_33 = arith.constant 0 : index
    %38 = vector.load %arg7[%c0_32, %c0_33] : memref<1x128xf32, #tpu.memory_space<vmem>>, vector<1x128xf32>
    %39 = vector.broadcast %38 : vector<1x128xf32> to vector<128x128xf32>
    %40 = arith.addf %37, %39 : vector<128x128xf32>
    %41 = arith.truncf %40 : vector<128x128xf32> to vector<128x128xbf16>
    %c0_34 = arith.constant 0 : index
    %c0_35 = arith.constant 0 : index
    %42 = vector.load %arg8[%c0_34, %c0_35] : memref<128x128xbf16, #tpu.memory_space<vmem>>, vector<128x128xbf16>
    %cst_36 = arith.constant dense<0.000000e+00> : vector<128x128xf32>
    %43 = tpu.matmul %41, %42, %cst_36 {dimension_numbers = #tpu.dot_dimension_numbers<[1], [0], [0], [1], [0, 0, 1, 1], [], []>} : vector<128x128xbf16>, vector<128x128xbf16>, vector<128x128xf32> -> vector<128x128xf32>
    %c0_37 = arith.constant 0 : index
    %c0_38 = arith.constant 0 : index
    %44 = vector.load %arg9[%c0_37, %c0_38] : memref<1x128xf32, #tpu.memory_space<vmem>>, vector<1x128xf32>
    %45 = vector.broadcast %44 : vector<1x128xf32> to vector<128x128xf32>
    %46 = arith.addf %43, %45 : vector<128x128xf32>
    %c0_39 = arith.constant 0 : index
    %c0_40 = arith.constant 0 : index
    %47 = vector.load %arg10[%c0_39, %c0_40] : memref<128x128xf32, #tpu.memory_space<vmem>>, vector<128x128xf32>
    tpu.vector_store %arg10[%c0_39, %c0_40], %46 {strides = array<i32>} : memref<128x128xf32, #tpu.memory_space<vmem>>, vector<128x128xf32>,
    return
  }
}

</mosaic_0001>

<bundles_post_ra>
// kernel: tpu_custom_call.1
= control target key start
LH: loop header
LB: loop body
LE: loop exit
PB: predicated region body
PF: predicated region fallthrough
CT: control target
= control target key end

     0   :  { %15 = vsyncpa [#allocation4], 0  ;;  %s2551_s0 = inlined_call_operand.hbm [shape: bf16[128,128], index: 0, kind: input, shape index: {}]   ;;  %s2552_s1 = inlined_call_operand.hbm [shape: bf16[128,128], index: 1, kind: input, shape index: {}]   ;;  %s2553_s2 = inlined_call_operand.hbm [shape: bf16[128,128], index: 2, kind: input, shape index: {}]   ;;  %s2554_s3 = inlined_call_operand.vmem [shape: f32[1,128], index: 3, kind: input, shape index: {}]   ;;  %s2555_s4 = inlined_call_operand.hbm [shape: bf16[1,128,128], index: 4, kind: input, shape index: {}]   ;;  %s2556_s5 = inlined_call_operand.vmem [shape: f32[1,8,128], index: 5, kind: input, shape index: {}]   ;;  %s2557_s6 = inlined_call_operand.hbm [shape: bf16[128,128], index: 6, kind: input, shape index: {}]   ;;  %s2558_s7 = inlined_call_operand.vmem [shape: f32[1,128], index: 7, kind: input, shape index: {}]   ;;  %s2559_s8 = inlined_call_operand.hbm [shape: bf16[128,128], index: 8, kind: input, shape index: {}]   ;;  %s2560_s9 = inlined_call_operand.vmem [shape: f32[1,128], index: 9, kind: input, shape index: {}]   ;;  %s2561_s10 = inlined_call_operand.hbm [shape: f32[128,128], index: 10, kind: output, shape index: {}]  }
   0x1   :  { %16 = vsyncpa [#allocation7], 0 }
   0x2   :  { %17 = vsyncpa [#allocation10], 0 }
   0x3   :  { %18 = vsyncpa [#allocation13], 0 }
   0x4   :  { %19 = vsyncpa [#allocation5], 0  ;;  %s2190_s13 = smov [#allocation6]   ;;  %s2191_s15 = smov [#allocation9]  }
   0x5   :  { %s37_s14 = sshll.u32 %s2190_s13, 4  ;;  %s63_s16 = sshll.u32 %s2191_s15, 4  ;;  %s38_s14 = int_to_ptr.vmem [resolvable:$true] %s37_s14  ;;  %s2256_s16 = int_to_ptr.vmem [resolvable:$true] %s63_s16 }
   0x6   :  { %s2026_s19 = scalar_lea.hbm %s2552_s1, 1024 }
   0x7   :  { %p2027_p0 = scmp.ne.s32.totalorder %s2552_s1, %s2026_s19  ;;  %p2030_p1 = scmp.lt.u32.totalorder %s2026_s19, %s2552_s1 }
   0x9   :  { %p2032_p2 = pnand %p2030_p1, %p2027_p0 }
   0xb   :  { %2035 = shalt.err (!%p2032_p2)
}
   0xc   :  { %s2036_s24 = scalar_lea.vmem %s38_s14, 1024  ;;  %p2041_p4 = scmp.lt.s32.totalorder %s38_s14, %s38_s14 }
   0xd   :  { %p2037_p3 = scmp.ne.s32.totalorder %s38_s14, %s2036_s24  ;;  %p2042_p5 = scmp.lt.s32.totalorder %s2036_s24, %s2036_s24 }
   0xf   :  { %p2043_p6 = por %p2042_p5, %p2041_p4 }
  0x11   :  { %p2044_p7 = pnand %p2043_p6, %p2037_p3 }
  0x13   :  { %2047 = shalt.err (!%p2044_p7)
}
  0x14   :  { %s2192_s25 = smov 64   ;;  %s2193_s26 = smov 4  }
  0x15   :  { %43 = dma.hbm_to_vmem [thread:$0]  %s2552_s1, 1024, %s38_s14, [#allocation7], %s2192_s25, %s2192_s25, %s2193_s26  }
  0x16   :  { %s2048_s11 = scalar_lea.hbm %s2555_s4, 1024 }
  0x17   :  { %p2049_p8 = scmp.ne.s32.totalorder %s2555_s4, %s2048_s11  ;;  %p2052_p9 = scmp.lt.u32.totalorder %s2048_s11, %s2555_s4 }
  0x19   :  { %p2054_p10 = pnand %p2052_p9, %p2049_p8 }
  0x1b   :  { %2057 = shalt.err (!%p2054_p10)
}
  0x1c   :  { %s2058_s18 = scalar_lea.vmem %s2256_s16, 1024  ;;  %p2063_p12 = scmp.lt.s32.totalorder %s2256_s16, %s2256_s16 }
  0x1d   :  { %p2059_p11 = scmp.ne.s32.totalorder %s2256_s16, %s2058_s18  ;;  %p2064_p13 = scmp.lt.s32.totalorder %s2058_s18, %s2058_s18 }
  0x1f   :  { %p2065_p0 = por %p2064_p13, %p2063_p12 }
  0x21   :  { %p2066_p1 = pnand %p2065_p0, %p2059_p11 }
  0x23   :  { %2069 = shalt.err (!%p2066_p1)
}
  0x24   :  { %69 = dma.hbm_to_vmem [thread:$0]  %s2555_s4, 1024, %s2256_s16, [#allocation10], %s2192_s25, %s2192_s25, %s2193_s26  }
  0x25   :  { %s2194_s19 = smov [#allocation3]   ;;  %s2195_s21 = smov [#allocation8]  }
  0x26   :  { %s25_s20 = sshll.u32 %s2194_s19, 4  ;;  %s49_s22 = sshll.u32 %s2195_s21, 4  ;;  %s26_s20 = int_to_ptr.vmem [resolvable:$true] %s25_s20  ;;  %s2293_s22 = int_to_ptr.vmem [resolvable:$true] %s49_s22 }
  0x27   :  { %s2070_s27 = scalar_lea.hbm %s2551_s0, 1024 }
  0x28   :  { %p2071_p2 = scmp.ne.s32.totalorder %s2551_s0, %s2070_s27  ;;  %p2074_p3 = scmp.lt.u32.totalorder %s2070_s27, %s2551_s0 }
  0x2a   :  { %p2076_p4 = pnand %p2074_p3, %p2071_p2 }
  0x2c   :  { %2079 = shalt.err (!%p2076_p4)
}
  0x2d   :  { %s2080_s4 = scalar_lea.vmem %s26_s20, 1024  ;;  %p2085_p6 = scmp.lt.s32.totalorder %s26_s20, %s26_s20 }
  0x2e   :  { %p2081_p5 = scmp.ne.s32.totalorder %s26_s20, %s2080_s4  ;;  %p2086_p7 = scmp.lt.s32.totalorder %s2080_s4, %s2080_s4 }
  0x30   :  { %p2087_p8 = por %p2086_p7, %p2085_p6 }
  0x32   :  { %p2088_p9 = pnand %p2087_p8, %p2081_p5 }
  0x34   :  { %2091 = shalt.err (!%p2088_p9)
}
  0x35   :  { %31 = dma.hbm_to_vmem [thread:$0]  %s2551_s0, 1024, %s26_s20, [#allocation4], %s2192_s25, %s2192_s25, %s2193_s26  }
  0x36   :  { %s2092_s17 = scalar_lea.hbm %s2553_s2, 1024 }
  0x37   :  { %p2093_p10 = scmp.ne.s32.totalorder %s2553_s2, %s2092_s17  ;;  %p2096_p11 = scmp.lt.u32.totalorder %s2092_s17, %s2553_s2 }
  0x39   :  { %p2098_p12 = pnand %p2096_p11, %p2093_p10 }
  0x3b   :  { %2101 = shalt.err (!%p2098_p12)
}
  0x3c   :  { %s2102_s21 = scalar_lea.vmem %s2293_s22, 1024  ;;  %p2107_p0 = scmp.lt.s32.totalorder %s2293_s22, %s2293_s22 }
  0x3d   :  { %p2103_p13 = scmp.ne.s32.totalorder %s2293_s22, %s2102_s21  ;;  %p2108_p1 = scmp.lt.s32.totalorder %s2102_s21, %s2102_s21 }
  0x3f   :  { %p2109_p2 = por %p2108_p1, %p2107_p0 }
  0x41   :  { %p2110_p3 = pnand %p2109_p2, %p2103_p13 }
  0x43   :  { %2113 = shalt.err (!%p2110_p3)
}
  0x44   :  { %55 = dma.hbm_to_vmem [thread:$0]  %s2553_s2, 1024, %s2293_s22, [#allocation7], %s2192_s25, %s2192_s25, %s2193_s26  }
  0x45   :  { %s2196_s23 = smov [#allocation11]   ;;  %s2197_s27 = smov [#allocation12]  }
  0x46   :  { %s77_s24 = sshll.u32 %s2196_s23, 4  ;;  %s91_s28 = sshll.u32 %s2197_s27, 4  ;;  %s78_s24 = int_to_ptr.vmem [resolvable:$true] %s77_s24  ;;  %s2330_s28 = int_to_ptr.vmem [resolvable:$true] %s91_s28 }
  0x47   :  { %s2114_s11 = scalar_lea.hbm %s2557_s6, 1024 }
  0x48   :  { %p2115_p4 = scmp.ne.s32.totalorder %s2557_s6, %s2114_s11  ;;  %p2118_p5 = scmp.lt.u32.totalorder %s2114_s11, %s2557_s6 }
  0x4a   :  { %p2120_p6 = pnand %p2118_p5, %p2115_p4 }
  0x4c   :  { %2123 = shalt.err (!%p2120_p6)
}
  0x4d   :  { %s2124_s2 = scalar_lea.vmem %s78_s24, 1024  ;;  %p2129_p8 = scmp.lt.s32.totalorder %s78_s24, %s78_s24 }
  0x4e   :  { %p2125_p7 = scmp.ne.s32.totalorder %s78_s24, %s2124_s2  ;;  %p2130_p9 = scmp.lt.s32.totalorder %s2124_s2, %s2124_s2 }
  0x50   :  { %p2131_p10 = por %p2130_p9, %p2129_p8 }
  0x52   :  { %p2132_p11 = pnand %p2131_p10, %p2125_p7 }
  0x54   :  { %2135 = shalt.err (!%p2132_p11)
}
  0x55   :  { %83 = dma.hbm_to_vmem [thread:$0]  %s2557_s6, 1024, %s78_s24, [#allocation10], %s2192_s25, %s2192_s25, %s2193_s26  }
  0x56   :  { %s2136_s1 = scalar_lea.hbm %s2559_s8, 1024 }
  0x57   :  { %p2137_p12 = scmp.ne.s32.totalorder %s2559_s8, %s2136_s1  ;;  %p2140_p13 = scmp.lt.u32.totalorder %s2136_s1, %s2559_s8 }
  0x59   :  { %p2142_p0 = pnand %p2140_p13, %p2137_p12 }
  0x5b   :  { %2145 = shalt.err (!%p2142_p0)
}
  0x5c   :  { %s2146_s20 = scalar_lea.vmem %s2330_s28, 1024  ;;  %p2151_p2 = scmp.lt.s32.totalorder %s2330_s28, %s2330_s28 }
  0x5d   :  { %p2147_p1 = scmp.ne.s32.totalorder %s2330_s28, %s2146_s20  ;;  %p2152_p3 = scmp.lt.s32.totalorder %s2146_s20, %s2146_s20 }
  0x5f   :  { %p2153_p4 = por %p2152_p3, %p2151_p2 }
  0x61   :  { %p2154_p5 = pnand %p2153_p4, %p2147_p1 }
  0x63   :  { %2157 = shalt.err (!%p2154_p5)
}
  0x64   :  { %97 = dma.hbm_to_vmem [thread:$0]  %s2559_s8, 1024, %s2330_s28, [#allocation13], %s2192_s25, %s2192_s25, %s2193_s26  }
  0x65   :  { %2180 = dma.done.wait [#allocation4], 1024  }
  0x66   :  { %2181 = vsyncadd [#allocation4], 4294966272 }
  0x67   :  { %2182 = dma.done.wait [#allocation7], 2048  }
  0x68   :  { %2183 = vsyncadd [#allocation7], 4294965248 }
  0x69   :  { %2184 = dma.done.wait [#allocation10], 2048  }
  0x6a   :  { %2185 = vsyncadd [#allocation10], 4294965248 }
  0x6b   :  { %2186 = dma.done.wait [#allocation13], 1024  }
  0x6c   :  { %2187 = vsyncadd [#allocation13], 4294966272  ;;  %v1962_v0 = vld [vmem:[#allocation8] sm:$0xff]   ;;  %v1963_v1 = vld [vmem:[#allocation8 + $0x8] sm:$0xff]  }
  0x6d   :  { %1711 = vmatprep.subr.bf16.mxu0 %v1962_v0  ;;  %v1964_v2 = vld [vmem:[#allocation8 + $0x10] sm:$0xff]   ;;  %v1965_v3 = vld [vmem:[#allocation8 + $0x18] sm:$0xff]   ;;  %v1970_v4 = vld [vmem:[#allocation3] sm:$0xff]  }
  0x6e   :  { %1712 = vmatpush3.bf16.msra.mxu0 %v1962_v0  ;;  %1727 = vmatprep.mubr.bf16.mxu0 %v1970_v4  ;;  %v1966_v5 = vld [vmem:[#allocation8 + $0x20] sm:$0xff]   ;;  %v1967_v6 = vld [vmem:[#allocation8 + $0x28] sm:$0xff]   ;;  %v1968_v7 = vld [vmem:[#allocation8 + $0x30] sm:$0xff]  }
  0x6f   :  { %1713 = vmatprep.subr.bf16.mxu0 %v1963_v1  ;;  %v1969_v8 = vld [vmem:[#allocation8 + $0x38] sm:$0xff]   ;;  %v1971_v9 = vld [vmem:[#allocation3 + $0x8] sm:$0xff]   ;;  %v1972_v10 = vld [vmem:[#allocation3 + $0x10] sm:$0xff]  }
  0x70   :  { %v1973_v11 = vld [vmem:[#allocation3 + $0x18] sm:$0xff]   ;;  %v1974_v12 = vld [vmem:[#allocation3 + $0x20] sm:$0xff]   ;;  %v1975_v13 = vld [vmem:[#allocation3 + $0x28] sm:$0xff]  }
  0x71   :  { %v1976_v14 = vld [vmem:[#allocation3 + $0x30] sm:$0xff]   ;;  %v1977_v15 = vld [vmem:[#allocation3 + $0x38] sm:$0xff]   ;;  %v1978_v16 = vld [vmem:[#allocation6] sm:$0xff]  }
  0x72   :  { %1714 = vmatpush3.bf16.msra.mxu0 %v1963_v1  ;;  %1759 = vmatprep.mubr.bf16.mxu1 %v1978_v16  ;;  %v1986_v17 = vld [vmem:[#allocation9] sm:$0xff]   ;;  %v1987_v18 = vld [vmem:[#allocation9 + $0x8] sm:$0xff]   ;;  %v1988_v19 = vld [vmem:[#allocation9 + $0x10] sm:$0xff]  }
  0x73   :  { %1715 = vmatprep.subr.bf16.mxu0 %v1964_v2  ;;  %v1989_v20 = vld [vmem:[#allocation9 + $0x18] sm:$0xff]   ;;  %v1990_v21 = vld [vmem:[#allocation9 + $0x20] sm:$0xff]   ;;  %v1991_v22 = vld [vmem:[#allocation9 + $0x28] sm:$0xff]  }
  0x74   :  { %v1979_v47 = vld [vmem:[#allocation6 + $0x8] sm:$0xff]   ;;  %v1980_v48 = vld [vmem:[#allocation6 + $0x10] sm:$0xff]   ;;  %v1981_v49 = vld [vmem:[#allocation6 + $0x18] sm:$0xff]  }
  0x75   :  { %v1982_v50 = vld [vmem:[#allocation6 + $0x20] sm:$0xff]   ;;  %v1983_v51 = vld [vmem:[#allocation6 + $0x28] sm:$0xff]   ;;  %v1984_v52 = vld [vmem:[#allocation6 + $0x30] sm:$0xff]  }
  0x76   :  { %1716 = vmatpush3.bf16.msra.mxu0 %v1964_v2  ;;  %v1985_v53 = vld [vmem:[#allocation6 + $0x38] sm:$0xff]   ;;  %v1992_v54 = vld [vmem:[#allocation9 + $0x30] sm:$0xff]   ;;  %v1548_v56 = vld [vmem:[%s2554_s3] ss:$0 sm:$0xff] }
  0x77   :  { %1717 = vmatprep.subr.bf16.mxu0 %v1965_v3  ;;  %v1993_v55 = vld [vmem:[#allocation9 + $0x38] sm:$0xff]  }
  0x7a   :  { %1718 = vmatpush3.bf16.msra.mxu0 %v1965_v3 }
  0x7b   :  { %1719 = vmatprep.subr.bf16.mxu0 %v1966_v5 }
  0x7e   :  { %1720 = vmatpush3.bf16.msra.mxu0 %v1966_v5 }
  0x7f   :  { %1721 = vmatprep.subr.bf16.mxu0 %v1967_v6 }
  0x82   :  { %1722 = vmatpush3.bf16.msra.mxu0 %v1967_v6 }
  0x83   :  { %1723 = vmatprep.subr.bf16.mxu0 %v1968_v7 }
  0x86   :  { %1724 = vmatpush3.bf16.msra.mxu0 %v1968_v7 }
  0x87   :  { %1725 = vmatprep.subr.bf16.mxu0 %v1969_v8 }
  0x8a   :  { %1726 = vmatpush3.bf16.msra.mxu0 %v1969_v8 }
  0x8b   :  { %1775 = vmatprep.subr.bf16.mxu0 %v1986_v17 }
  0x8d   :  { %1728 = vmatmul.mubr.bf16.vlgmr.msra.gmra.mrb[0].mxu0 %v1971_v9 }
  0x8e   :  { %1731 = vmatprep.mubr.bf16.mxu0 %v1972_v10  ;;  %1776 = vmatpush3.bf16.msra.mxu0 %v1986_v17 }
  0x8f   :  { %1777 = vmatprep.subr.bf16.mxu0 %v1987_v18 }
  0x92   :  { %1778 = vmatpush3.bf16.msra.mxu0 %v1987_v18 }
  0x93   :  { %1779 = vmatprep.subr.bf16.mxu0 %v1988_v19 }
  0x95   :  { %1732 = vmatmul.mubr.bf16.gmra.mrb[4].mxu0 %v1973_v11 }
  0x96   :  { %1735 = vmatprep.mubr.bf16.mxu0 %v1974_v12  ;;  %1780 = vmatpush3.bf16.msra.mxu0 %v1988_v19 }
  0x97   :  { %1781 = vmatprep.subr.bf16.mxu0 %v1989_v20 }
  0x9a   :  { %1782 = vmatpush3.bf16.msra.mxu0 %v1989_v20 }
  0x9b   :  { %1783 = vmatprep.subr.bf16.mxu0 %v1990_v21 }
  0x9d   :  { %1736 = vmatmul.mubr.bf16.gmra.mrb[8].mxu0 %v1975_v13 }
  0x9e   :  { %1739 = vmatprep.mubr.bf16.mxu0 %v1976_v14  ;;  %1784 = vmatpush3.bf16.msra.mxu0 %v1990_v21 }
  0x9f   :  { %1785 = vmatprep.subr.bf16.mxu0 %v1991_v22 }
  0xa2   :  { %1786 = vmatpush3.bf16.msra.mxu0 %v1991_v22 }
  0xa3   :  { %1787 = vmatprep.subr.bf16.mxu0 %v1992_v54 }
  0xa5   :  { %1740 = vmatmul.mubr.bf16.gmra.mrb[12].mxu0 %v1977_v15 }
  0xa6   :  { %1788 = vmatpush3.bf16.msra.mxu0 %v1992_v54  ;;  %v2006_v54 = vld [vmem:[#allocation11 + $0x20] sm:$0xff]  }
  0xa7   :  { %1789 = vmatprep.subr.bf16.mxu0 %v1993_v55 }
  0xaa   :  { %1790 = vmatpush3.bf16.msra.mxu0 %v1993_v55 }
 0x160   :  { %v1729_v23 = vpop.f32.mrb[0].mxu0 }
 0x161   :  { %v281_v24 = vpop.f32.mrb[1].mxu0 }
 0x162   :  { %v1730_v25 = vpop.f32.mrb[2].mxu0 }
 0x163   :  { %v361_v26 = vpack.c.bf16 %v1730_v25, %v1729_v23  ;;  %v284_v27 = vpop.f32.mrb[3].mxu0 }
 0x164   :  { %v360_v28 = vpack.c.bf16 %v284_v27, %v281_v24 }
 0x166   :  { %1743 = vmatprep.subr.bf16.mxu1 %v360_v28 }
 0x167   :  { %1744 = vmatpush3.bf16.msra.mxu1 %v360_v28 }
 0x168   :  { %v1733_v29 = vpop.f32.mrb[4].mxu0  ;;  %1745 = vmatprep.subr.bf16.mxu1 %v361_v26 }
 0x169   :  { %v297_v30 = vpop.f32.mrb[5].mxu0 }
 0x16a   :  { %v1734_v31 = vpop.f32.mrb[6].mxu0 }
 0x16b   :  { %v363_v32 = vpack.c.bf16 %v1734_v31, %v1733_v29  ;;  %v300_v33 = vpop.f32.mrb[7].mxu0  ;;  %1746 = vmatpush3.bf16.msra.mxu1 %v361_v26 }
 0x16c   :  { %v362_v34 = vpack.c.bf16 %v300_v33, %v297_v30 }
 0x16e   :  { %1747 = vmatprep.subr.bf16.mxu1 %v362_v34 }
 0x16f   :  { %1748 = vmatpush3.bf16.msra.mxu1 %v362_v34 }
 0x170   :  { %v1737_v35 = vpop.f32.mrb[8].mxu0  ;;  %1749 = vmatprep.subr.bf16.mxu1 %v363_v32 }
 0x171   :  { %v313_v36 = vpop.f32.mrb[9].mxu0 }
 0x172   :  { %v1738_v37 = vpop.f32.mrb[10].mxu0 }
 0x173   :  { %v365_v38 = vpack.c.bf16 %v1738_v37, %v1737_v35  ;;  %v316_v39 = vpop.f32.mrb[11].mxu0  ;;  %1750 = vmatpush3.bf16.msra.mxu1 %v363_v32 }
 0x174   :  { %v364_v40 = vpack.c.bf16 %v316_v39, %v313_v36 }
 0x176   :  { %1751 = vmatprep.subr.bf16.mxu1 %v364_v40 }
 0x177   :  { %1752 = vmatpush3.bf16.msra.mxu1 %v364_v40 }
 0x178   :  { %v1741_v41 = vpop.f32.mrb[12].mxu0  ;;  %1753 = vmatprep.subr.bf16.mxu1 %v365_v38 }
 0x179   :  { %v329_v42 = vpop.f32.mrb[13].mxu0 }
 0x17a   :  { %v1742_v43 = vpop.f32.mrb[14].mxu0 }
 0x17b   :  { %v367_v44 = vpack.c.bf16 %v1742_v43, %v1741_v41  ;;  %v332_v45 = vpop.f32.mrb[15].mxu0  ;;  %1754 = vmatpush3.bf16.msra.mxu1 %v365_v38 }
 0x17c   :  { %v366_v46 = vpack.c.bf16 %v332_v45, %v329_v42 }
 0x17e   :  { %1755 = vmatprep.subr.bf16.mxu1 %v366_v46 }
 0x17f   :  { %1756 = vmatpush3.bf16.msra.mxu1 %v366_v46 }
 0x180   :  { %1757 = vmatprep.subr.bf16.mxu1 %v367_v44 }
 0x183   :  { %1758 = vmatpush3.bf16.msra.mxu1 %v367_v44 }
 0x186   :  { %1760 = vmatmul.mubr.bf16.vlgmr.msra.gmra.mrb[0].mxu1 %v1979_v47 }
 0x187   :  { %1763 = vmatprep.mubr.bf16.mxu1 %v1980_v48 }
 0x18e   :  { %1764 = vmatmul.mubr.bf16.gmra.mrb[4].mxu1 %v1981_v49  ;;  %v1994_v49 = vld [vmem:[#allocation6] sm:$0xff]  }
 0x18f   :  { %1767 = vmatprep.mubr.bf16.mxu1 %v1982_v50  ;;  %v2002_v50 = vld [vmem:[#allocation11] sm:$0xff]  }
 0x190   :  { %1839 = vmatprep.subr.bf16.mxu0 %v2002_v50 }
 0x196   :  { %1768 = vmatmul.mubr.bf16.gmra.mrb[8].mxu1 %v1983_v51  ;;  %v2003_v51 = vld [vmem:[#allocation11 + $0x8] sm:$0xff]  }
 0x197   :  { %1771 = vmatprep.mubr.bf16.mxu1 %v1984_v52  ;;  %v2004_v52 = vld [vmem:[#allocation11 + $0x10] sm:$0xff]  }
 0x19e   :  { %1772 = vmatmul.mubr.bf16.gmra.mrb[12].mxu1 %v1985_v53  ;;  %v2005_v53 = vld [vmem:[#allocation11 + $0x18] sm:$0xff]  }
 0x19f   :  { %1823 = vmatprep.mubr.bf16.mxu1 %v1994_v49  ;;  %v1997_v49 = vld [vmem:[#allocation6 + $0x18] sm:$0xff]  }
 0x259   :  { %v1761_v57 = vpop.f32.mrb[0].mxu1 }
 0x25a   :  { %v457_v58 = vpop.f32.mrb[1].mxu1  ;;  %v2372_v61 = vadd.f32 %v1761_v57, %v1548_v56 }
 0x25b   :  { %v2370_v59 = vadd.f32 %v1548_v56, %v457_v58  ;;  %v1762_v60 = vpop.f32.mrb[2].mxu1 }
 0x25c   :  { %v2374_v62 = vadd.f32 %v1762_v60, %v1548_v56  ;;  %v460_v63 = vpop.f32.mrb[3].mxu1  ;;  %v522_v4 = vmax.f32 %v2372_v61, 0.0 }
 0x25d   :  { %v2376_v0 = vadd.f32 %v1548_v56, %v460_v63  ;;  %v520_v2 = vmax.f32 %v2370_v59, 0.0 }
 0x25e   :  { %v523_v1 = vmax.f32 %v2374_v62, 0.0 }
 0x25f   :  { %v521_v3 = vmax.f32 %v2376_v0, 0.0 }
 0x260   :  { %v569_v7 = vpack.c.bf16 %v523_v1, %v522_v4 }
 0x261   :  { %v568_v5 = vpack.c.bf16 %v521_v3, %v520_v2  ;;  %v1765_v6 = vpop.f32.mrb[4].mxu1 }
 0x262   :  { %v473_v8 = vpop.f32.mrb[5].mxu1  ;;  %v2392_v11 = vadd.f32 %v1765_v6, %v1548_v56 }
 0x263   :  { %v2390_v9 = vadd.f32 %v1548_v56, %v473_v8  ;;  %v1766_v10 = vpop.f32.mrb[6].mxu1  ;;  %1791 = vmatprep.mubr.bf16.mxu0 %v568_v5 }
 0x264   :  { %v2394_v12 = vadd.f32 %v1766_v10, %v1548_v56  ;;  %v476_v13 = vpop.f32.mrb[7].mxu1  ;;  %1792 = vmatmul.mubr.bf16.vlgmr.msra.gmra.mrb[16].mxu0 %v569_v7  ;;  %v526_v18 = vmax.f32 %v2392_v11, 0.0 }
 0x265   :  { %v2396_v14 = vadd.f32 %v1548_v56, %v476_v13  ;;  %v524_v16 = vmax.f32 %v2390_v9, 0.0  ;;  %1840 = vmatpush3.bf16.msra.mxu0 %v2002_v50  ;;  %v1998_v50 = vld [vmem:[#allocation6 + $0x20] sm:$0xff]  }
 0x266   :  { %v527_v15 = vmax.f32 %v2394_v12, 0.0  ;;  %1841 = vmatprep.subr.bf16.mxu0 %v2003_v51 }
 0x267   :  { %v525_v17 = vmax.f32 %v2396_v14, 0.0 }
 0x268   :  { %v571_v21 = vpack.c.bf16 %v527_v15, %v526_v18 }
 0x269   :  { %v570_v19 = vpack.c.bf16 %v525_v17, %v524_v16  ;;  %v1769_v20 = vpop.f32.mrb[8].mxu1  ;;  %1842 = vmatpush3.bf16.msra.mxu0 %v2003_v51  ;;  %v1999_v51 = vld [vmem:[#allocation6 + $0x28] sm:$0xff]  }
 0x26a   :  { %v489_v22 = vpop.f32.mrb[9].mxu1  ;;  %v2412_v25 = vadd.f32 %v1769_v20, %v1548_v56  ;;  %1843 = vmatprep.subr.bf16.mxu0 %v2004_v52 }
 0x26b   :  { %v2410_v23 = vadd.f32 %v1548_v56, %v489_v22  ;;  %v1770_v24 = vpop.f32.mrb[10].mxu1  ;;  %1795 = vmatprep.mubr.bf16.mxu0 %v570_v19 }
 0x26c   :  { %v2414_v26 = vadd.f32 %v1770_v24, %v1548_v56  ;;  %v492_v27 = vpop.f32.mrb[11].mxu1  ;;  %1796 = vmatmul.mubr.bf16.gmra.mrb[20].mxu0 %v571_v21  ;;  %v530_v32 = vmax.f32 %v2412_v25, 0.0 }
 0x26d   :  { %v2416_v28 = vadd.f32 %v1548_v56, %v492_v27  ;;  %v528_v30 = vmax.f32 %v2410_v23, 0.0  ;;  %1844 = vmatpush3.bf16.msra.mxu0 %v2004_v52  ;;  %v2000_v52 = vld [vmem:[#allocation6 + $0x30] sm:$0xff]  }
 0x26e   :  { %v531_v29 = vmax.f32 %v2414_v26, 0.0  ;;  %1845 = vmatprep.subr.bf16.mxu0 %v2005_v53 }
 0x26f   :  { %v529_v31 = vmax.f32 %v2416_v28, 0.0 }
 0x270   :  { %v573_v35 = vpack.c.bf16 %v531_v29, %v530_v32 }
 0x271   :  { %v572_v33 = vpack.c.bf16 %v529_v31, %v528_v30  ;;  %v1773_v34 = vpop.f32.mrb[12].mxu1  ;;  %1846 = vmatpush3.bf16.msra.mxu0 %v2005_v53  ;;  %v2001_v53 = vld [vmem:[#allocation6 + $0x38] sm:$0xff]  }
 0x272   :  { %v505_v36 = vpop.f32.mrb[13].mxu1  ;;  %v2432_v39 = vadd.f32 %v1773_v34, %v1548_v56  ;;  %1847 = vmatprep.subr.bf16.mxu0 %v2006_v54 }
 0x273   :  { %v2430_v37 = vadd.f32 %v1548_v56, %v505_v36  ;;  %v1774_v38 = vpop.f32.mrb[14].mxu1  ;;  %1799 = vmatprep.mubr.bf16.mxu0 %v572_v33 }
 0x274   :  { %v2434_v40 = vadd.f32 %v1774_v38, %v1548_v56  ;;  %v508_v41 = vpop.f32.mrb[15].mxu1  ;;  %1800 = vmatmul.mubr.bf16.gmra.mrb[24].mxu0 %v573_v35  ;;  %v534_v46 = vmax.f32 %v2432_v39, 0.0  ;;  %v2506_v39 = vld [vmem:[#allocation12 + $0x10] sm:$0xff]  }
 0x275   :  { %v2436_v42 = vadd.f32 %v1548_v56, %v508_v41  ;;  %v532_v44 = vmax.f32 %v2430_v37, 0.0  ;;  %1848 = vmatpush3.bf16.msra.mxu0 %v2006_v54  ;;  %v2007_v54 = vld [vmem:[#allocation11 + $0x28] sm:$0xff]   ;;  %v2510_v37 = vld [vmem:[#allocation12 + $0x18] sm:$0xff]  }
 0x276   :  { %v535_v43 = vmax.f32 %v2434_v40, 0.0  ;;  %1849 = vmatprep.subr.bf16.mxu0 %v2007_v54  ;;  %v2514_v40 = vld [vmem:[#allocation12 + $0x20] sm:$0xff]  }
 0x277   :  { %v533_v45 = vmax.f32 %v2436_v42, 0.0  ;;  %v2518_v42 = vld [vmem:[#allocation12 + $0x28] sm:$0xff]  }
 0x278   :  { %v575_v48 = vpack.c.bf16 %v535_v43, %v534_v46 }
 0x279   :  { %v574_v47 = vpack.c.bf16 %v533_v45, %v532_v44  ;;  %1850 = vmatpush3.bf16.msra.mxu0 %v2007_v54 }
 0x27b   :  { %1803 = vmatprep.mubr.bf16.mxu0 %v574_v47  ;;  %v1995_v47 = vld [vmem:[#allocation6 + $0x8] sm:$0xff]  }
 0x27c   :  { %1804 = vmatmul.mubr.bf16.gmra.mrb[28].mxu0 %v575_v48  ;;  %v1996_v48 = vld [vmem:[#allocation6 + $0x10] sm:$0xff]  }
 0x337   :  { %v1793_v55 = vpop.f32.mrb[16].mxu0 }
 0x338   :  { %v674_v56 = vpop.f32.mrb[17].mxu0 }
 0x339   :  { %v1794_v57 = vpop.f32.mrb[18].mxu0 }
 0x33a   :  { %v754_v58 = vpack.c.bf16 %v1794_v57, %v1793_v55  ;;  %v677_v60 = vpop.f32.mrb[19].mxu0  ;;  %v2008_v55 = vld [vmem:[#allocation11 + $0x30] sm:$0xff]   ;;  %v762_v57 = vlaneseq }
 0x33b   :  { %v753_v63 = vpack.c.bf16 %v677_v60, %v674_v56  ;;  %1851 = vmatprep.subr.bf16.mxu0 %v2008_v55  ;;  %v2009_v56 = vld [vmem:[#allocation11 + $0x38] sm:$0xff]  }
 0x33c   :  { %1852 = vmatpush3.bf16.msra.mxu0 %v2008_v55 }
 0x33d   :  { %1807 = vmatprep.subr.bf16.mxu1 %v753_v63  ;;  %1853 = vmatprep.subr.bf16.mxu0 %v2009_v56 }
 0x33e   :  { %1808 = vmatpush3.bf16.msra.mxu1 %v753_v63  ;;  %v761_v63 = vld [vmem:[%s2556_s5] sm:$0xff] }
 0x33f   :  { %v1797_v5 = vpop.f32.mrb[20].mxu0  ;;  %1809 = vmatprep.subr.bf16.mxu1 %v754_v58 }
 0x340   :  { %v690_v6 = vpop.f32.mrb[21].mxu0  ;;  %1854 = vmatpush3.bf16.msra.mxu0 %v2009_v56 }
 0x341   :  { %v1798_v7 = vpop.f32.mrb[22].mxu0 }
 0x342   :  { %v756_v8 = vpack.c.bf16 %v1798_v7, %v1797_v5  ;;  %v693_v10 = vpop.f32.mrb[23].mxu0  ;;  %1810 = vmatpush3.bf16.msra.mxu1 %v754_v58  ;;  %v763_v58 = vshrl.u32 %v762_v57, 7 }
 0x343   :  { %v755_v13 = vpack.c.bf16 %v693_v10, %v690_v6 }
 0x344   :  { %v764_v60 = vsub.s32 0, %v763_v58 }
 0x345   :  { %1811 = vmatprep.subr.bf16.mxu1 %v755_v13 }
 0x346   :  { %1812 = vmatpush3.bf16.msra.mxu1 %v755_v13  ;;  %v2453_v5 = vrot.slane %v761_v63, %v764_v60 }
 0x347   :  { %v1801_v19 = vpop.f32.mrb[24].mxu0  ;;  %1813 = vmatprep.subr.bf16.mxu1 %v756_v8 }
 0x348   :  { %v706_v20 = vpop.f32.mrb[25].mxu0 }
 0x349   :  { %v1802_v21 = vpop.f32.mrb[26].mxu0 }
 0x34a   :  { %v758_v22 = vpack.c.bf16 %v1802_v21, %v1801_v19  ;;  %v709_v24 = vpop.f32.mrb[27].mxu0  ;;  %1814 = vmatpush3.bf16.msra.mxu1 %v756_v8 }
 0x34b   :  { %v757_v27 = vpack.c.bf16 %v709_v24, %v706_v20 }
 0x34d   :  { %1815 = vmatprep.subr.bf16.mxu1 %v757_v27 }
 0x34e   :  { %1816 = vmatpush3.bf16.msra.mxu1 %v757_v27 }
 0x34f   :  { %v1805_v33 = vpop.f32.mrb[28].mxu0  ;;  %1817 = vmatprep.subr.bf16.mxu1 %v758_v22 }
 0x350   :  { %v722_v34 = vpop.f32.mrb[29].mxu0 }
 0x351   :  { %v1806_v35 = vpop.f32.mrb[30].mxu0 }
 0x352   :  { %v760_v36 = vpack.c.bf16 %v1806_v35, %v1805_v33  ;;  %v725_v38 = vpop.f32.mrb[31].mxu0  ;;  %1818 = vmatpush3.bf16.msra.mxu1 %v758_v22 }
 0x353   :  { %v759_v41 = vpack.c.bf16 %v725_v38, %v722_v34 }
 0x355   :  { %1819 = vmatprep.subr.bf16.mxu1 %v759_v41 }
 0x356   :  { %1820 = vmatpush3.bf16.msra.mxu1 %v759_v41 }
 0x357   :  { %1821 = vmatprep.subr.bf16.mxu1 %v760_v36 }
 0x35a   :  { %1822 = vmatpush3.bf16.msra.mxu1 %v760_v36 }
 0x35d   :  { %1824 = vmatmul.mubr.bf16.vlgmr.msra.gmra.mrb[16].mxu1 %v1995_v47 }
 0x35e   :  { %1827 = vmatprep.mubr.bf16.mxu1 %v1996_v48 }
 0x365   :  { %1828 = vmatmul.mubr.bf16.gmra.mrb[20].mxu1 %v1997_v49 }
 0x366   :  { %1831 = vmatprep.mubr.bf16.mxu1 %v1998_v50 }
 0x36d   :  { %1832 = vmatmul.mubr.bf16.gmra.mrb[24].mxu1 %v1999_v51 }
 0x36e   :  { %1835 = vmatprep.mubr.bf16.mxu1 %v2000_v52 }
 0x375   :  { %1836 = vmatmul.mubr.bf16.gmra.mrb[28].mxu1 %v2001_v53 }
 0x430   :  { %v1825_v6 = vpop.f32.mrb[16].mxu1 }
 0x431   :  { %v857_v7 = vadd.f32 %v1825_v6, %v2453_v5  ;;  %v848_v8 = vpop.f32.mrb[17].mxu1 }
 0x432   :  { %v849_v10 = vadd.f32 %v848_v8, %v2453_v5  ;;  %v1826_v13 = vpop.f32.mrb[18].mxu1 }
 0x433   :  { %v913_v19 = vmax.f32 %v857_v7, 0.0  ;;  %v860_v20 = vadd.f32 %v1826_v13, %v2453_v5  ;;  %v851_v21 = vpop.f32.mrb[19].mxu1 }
 0x434   :  { %v911_v22 = vmax.f32 %v849_v10, 0.0  ;;  %v852_v24 = vadd.f32 %v851_v21, %v2453_v5 }
 0x435   :  { %v914_v27 = vmax.f32 %v860_v20, 0.0  ;;  %v929_v34 = vadd.f32 %v913_v19, %v522_v4 }
 0x436   :  { %v912_v33 = vmax.f32 %v852_v24, 0.0  ;;  %v927_v36 = vadd.f32 %v911_v22, %v520_v2 }
 0x437   :  { %v930_v35 = vadd.f32 %v914_v27, %v523_v1 }
 0x438   :  { %v928_v38 = vadd.f32 %v912_v33, %v521_v3  ;;  %v1829_v41 = vpop.f32.mrb[20].mxu1 }
 0x439   :  { %v976_v47 = vpack.c.bf16 %v930_v35, %v929_v34  ;;  %v873_v48 = vadd.f32 %v1829_v41, %v2453_v5  ;;  %v864_v49 = vpop.f32.mrb[21].mxu1 }
 0x43a   :  { %v865_v50 = vadd.f32 %v864_v49, %v2453_v5  ;;  %v1830_v51 = vpop.f32.mrb[22].mxu1  ;;  %v975_v52 = vpack.c.bf16 %v928_v38, %v927_v36 }
 0x43b   :  { %v917_v61 = vmax.f32 %v873_v48, 0.0  ;;  %v876_v4 = vadd.f32 %v1830_v51, %v2453_v5  ;;  %v867_v62 = vpop.f32.mrb[23].mxu1  ;;  %v2503_v48 = vld [vmem:[#allocation12 + $0x8] sm:$0xff]  }
 0x43c   :  { %v915_v1 = vmax.f32 %v865_v50, 0.0  ;;  %v868_v59 = vadd.f32 %v867_v62, %v2453_v5  ;;  %1855 = vmatprep.mubr.bf16.mxu0 %v975_v52 }
 0x43d   :  { %v918_v2 = vmax.f32 %v876_v4, 0.0  ;;  %1856 = vmatmul.mubr.bf16.vlgmr.msra.gmra.mrb[32].mxu0 %v976_v47  ;;  %v933_v3 = vadd.f32 %v917_v61, %v526_v18  ;;  %v2018_v47 = vld [vmem:[#allocation12] sm:$0xff]  }
 0x43e   :  { %v916_v0 = vmax.f32 %v868_v59, 0.0  ;;  %v931_v54 = vadd.f32 %v915_v1, %v524_v16  ;;  %1903 = vmatprep.subr.bf16.mxu0 %v2018_v47 }
 0x43f   :  { %v934_v53 = vadd.f32 %v918_v2, %v527_v15  ;;  %1904 = vmatpush3.bf16.msra.mxu0 %v2018_v47 }
 0x440   :  { %v932_v55 = vadd.f32 %v916_v0, %v525_v17  ;;  %v1833_v56 = vpop.f32.mrb[24].mxu1  ;;  %1905 = vmatprep.subr.bf16.mxu0 %v2503_v48 }
 0x441   :  { %v889_v57 = vadd.f32 %v1833_v56, %v2453_v5  ;;  %v880_v58 = vpop.f32.mrb[25].mxu1  ;;  %v978_v60 = vpack.c.bf16 %v934_v53, %v933_v3 }
 0x442   :  { %v881_v63 = vadd.f32 %v880_v58, %v2453_v5  ;;  %v1834_v6 = vpop.f32.mrb[26].mxu1  ;;  %v977_v7 = vpack.c.bf16 %v932_v55, %v931_v54 }
 0x443   :  { %v921_v11 = vmax.f32 %v889_v57, 0.0  ;;  %v892_v18 = vadd.f32 %v1834_v6, %v2453_v5  ;;  %v883_v12 = vpop.f32.mrb[27].mxu1  ;;  %1906 = vmatpush3.bf16.msra.mxu0 %v2503_v48  ;;  %v2011_v6 = vld [vmem:[#allocation6 + $0x8] sm:$0xff]  }
 0x444   :  { %v919_v15 = vmax.f32 %v881_v63, 0.0  ;;  %v884_v9 = vadd.f32 %v883_v12, %v2453_v5  ;;  %1859 = vmatprep.mubr.bf16.mxu0 %v977_v7  ;;  %1907 = vmatprep.subr.bf16.mxu0 %v2506_v39  ;;  %v2012_v7 = vld [vmem:[#allocation6 + $0x10] sm:$0xff]   ;;  %v2015_v12 = vld [vmem:[#allocation6 + $0x28] sm:$0xff]  }
 0x445   :  { %v922_v16 = vmax.f32 %v892_v18, 0.0  ;;  %1860 = vmatmul.mubr.bf16.gmra.mrb[36].mxu0 %v978_v60  ;;  %v937_v17 = vadd.f32 %v921_v11, %v530_v32  ;;  %v2013_v11 = vld [vmem:[#allocation6 + $0x18] sm:$0xff]   ;;  %v2014_v18 = vld [vmem:[#allocation6 + $0x20] sm:$0xff]  }
 0x446   :  { %v920_v14 = vmax.f32 %v884_v9, 0.0  ;;  %v935_v10 = vadd.f32 %v919_v15, %v528_v30  ;;  %v2016_v15 = vld [vmem:[#allocation6 + $0x30] sm:$0xff]   ;;  %v2017_v9 = vld [vmem:[#allocation6 + $0x38] sm:$0xff]  }
 0x447   :  { %v938_v8 = vadd.f32 %v922_v16, %v531_v29  ;;  %1908 = vmatpush3.bf16.msra.mxu0 %v2506_v39  ;;  %v2024_v16 = vld [vmem:[#allocation12 + $0x30] sm:$0xff]  }
 0x448   :  { %v936_v13 = vadd.f32 %v920_v14, %v529_v31  ;;  %v1837_v19 = vpop.f32.mrb[28].mxu1  ;;  %1909 = vmatprep.subr.bf16.mxu0 %v2510_v37  ;;  %v2025_v14 = vld [vmem:[#allocation12 + $0x38] sm:$0xff]  }
 0x449   :  { %v905_v20 = vadd.f32 %v1837_v19, %v2453_v5  ;;  %v896_v21 = vpop.f32.mrb[29].mxu1  ;;  %v980_v22 = vpack.c.bf16 %v938_v8, %v937_v17  ;;  %v1581_v8 = vld [vmem:[%s2558_s7] ss:$0 sm:$0xff] }
 0x44a   :  { %v897_v24 = vadd.f32 %v896_v21, %v2453_v5  ;;  %v1838_v27 = vpop.f32.mrb[30].mxu1  ;;  %v979_v33 = vpack.c.bf16 %v936_v13, %v935_v10 }
 0x44b   :  { %v925_v25 = vmax.f32 %v905_v20, 0.0  ;;  %v908_v32 = vadd.f32 %v1838_v27, %v2453_v5  ;;  %v899_v26 = vpop.f32.mrb[31].mxu1  ;;  %1910 = vmatpush3.bf16.msra.mxu0 %v2510_v37 }
 0x44c   :  { %v923_v29 = vmax.f32 %v897_v24, 0.0  ;;  %v900_v23 = vadd.f32 %v899_v26, %v2453_v5  ;;  %1863 = vmatprep.mubr.bf16.mxu0 %v979_v33  ;;  %v2010_v5 = vld [vmem:[#allocation6] sm:$0xff]   ;;  %1911 = vmatprep.subr.bf16.mxu0 %v2514_v40 }
 0x44d   :  { %v926_v30 = vmax.f32 %v908_v32, 0.0  ;;  %1864 = vmatmul.mubr.bf16.gmra.mrb[40].mxu0 %v980_v22  ;;  %v941_v31 = vadd.f32 %v925_v25, %v534_v46  ;;  %1887 = vmatprep.mubr.bf16.mxu1 %v2010_v5 }
 0x44e   :  { %v924_v28 = vmax.f32 %v900_v23, 0.0  ;;  %v939_v35 = vadd.f32 %v923_v29, %v532_v44 }
 0x44f   :  { %v942_v34 = vadd.f32 %v926_v30, %v535_v43  ;;  %1912 = vmatpush3.bf16.msra.mxu0 %v2514_v40 }
 0x450   :  { %v940_v36 = vadd.f32 %v924_v28, %v533_v45  ;;  %1913 = vmatprep.subr.bf16.mxu0 %v2518_v42 }
 0x451   :  { %v982_v38 = vpack.c.bf16 %v942_v34, %v941_v31 }
 0x452   :  { %v981_v41 = vpack.c.bf16 %v940_v36, %v939_v35 }
 0x453   :  { %1914 = vmatpush3.bf16.msra.mxu0 %v2518_v42 }
 0x454   :  { %1867 = vmatprep.mubr.bf16.mxu0 %v981_v41  ;;  %1915 = vmatprep.subr.bf16.mxu0 %v2024_v16 }
 0x455   :  { %1868 = vmatmul.mubr.bf16.gmra.mrb[44].mxu0 %v982_v38 }
 0x457   :  { %1916 = vmatpush3.bf16.msra.mxu0 %v2024_v16 }
 0x458   :  { %1917 = vmatprep.subr.bf16.mxu0 %v2025_v14 }
 0x45b   :  { %1918 = vmatpush3.bf16.msra.mxu0 %v2025_v14 }
 0x510   :  { %v1857_v43 = vpop.f32.mrb[32].mxu0 }
 0x511   :  { %v1081_v44 = vpop.f32.mrb[33].mxu0 }
 0x512   :  { %v1858_v45 = vpop.f32.mrb[34].mxu0 }
 0x513   :  { %v1161_v46 = vpack.c.bf16 %v1858_v45, %v1857_v43  ;;  %v1084_v49 = vpop.f32.mrb[35].mxu0 }
 0x514   :  { %v1160_v50 = vpack.c.bf16 %v1084_v49, %v1081_v44 }
 0x516   :  { %1871 = vmatprep.subr.bf16.mxu1 %v1160_v50 }
 0x517   :  { %1872 = vmatpush3.bf16.msra.mxu1 %v1160_v50 }
 0x518   :  { %v1861_v51 = vpop.f32.mrb[36].mxu0  ;;  %1873 = vmatprep.subr.bf16.mxu1 %v1161_v46 }
 0x519   :  { %v1097_v52 = vpop.f32.mrb[37].mxu0 }
 0x51a   :  { %v1862_v61 = vpop.f32.mrb[38].mxu0 }
 0x51b   :  { %v1163_v4 = vpack.c.bf16 %v1862_v61, %v1861_v51  ;;  %v1100_v62 = vpop.f32.mrb[39].mxu0  ;;  %1874 = vmatpush3.bf16.msra.mxu1 %v1161_v46 }
 0x51c   :  { %v1162_v1 = vpack.c.bf16 %v1100_v62, %v1097_v52  ;;  %v1590_v62 = vld [vmem:[%s2560_s9] ss:$0 sm:$0xff]  ;;  %s2198_s9 = smov [#allocation14]  }
 0x51d   :  { %s1517_s28 = sshll.u32 %s2198_s9, 4  ;;  %s1518_s28 = int_to_ptr.vmem [resolvable:$true] %s1517_s28 }
 0x51e   :  { %1875 = vmatprep.subr.bf16.mxu1 %v1162_v1  ;;  %s2158_s29 = scalar_lea.vmem %s1518_s28, 2048  ;;  %p2163_p7 = scmp.lt.s32.totalorder %s1518_s28, %s1518_s28 }
 0x51f   :  { %1876 = vmatpush3.bf16.msra.mxu1 %v1162_v1  ;;  %p2159_p6 = scmp.ne.s32.totalorder %s1518_s28, %s2158_s29  ;;  %p2164_p8 = scmp.lt.s32.totalorder %s2158_s29, %s2158_s29 }
 0x520   :  { %v1865_v59 = vpop.f32.mrb[40].mxu0  ;;  %1877 = vmatprep.subr.bf16.mxu1 %v1163_v4 }
 0x521   :  { %v1113_v2 = vpop.f32.mrb[41].mxu0  ;;  %p2165_p9 = por %p2164_p8, %p2163_p7 }
 0x522   :  { %v1866_v0 = vpop.f32.mrb[42].mxu0 }
 0x523   :  { %v1165_v3 = vpack.c.bf16 %v1866_v0, %v1865_v59  ;;  %v1116_v53 = vpop.f32.mrb[43].mxu0  ;;  %1878 = vmatpush3.bf16.msra.mxu1 %v1163_v4  ;;  %p2166_p10 = pnand %p2165_p9, %p2159_p6 }
 0x524   :  { %v1164_v54 = vpack.c.bf16 %v1116_v53, %v1113_v2 }
 0x526   :  { %1879 = vmatprep.subr.bf16.mxu1 %v1164_v54 }
 0x527   :  { %1880 = vmatpush3.bf16.msra.mxu1 %v1164_v54 }
 0x528   :  { %v1869_v55 = vpop.f32.mrb[44].mxu0  ;;  %1881 = vmatprep.subr.bf16.mxu1 %v1165_v3 }
 0x529   :  { %v1129_v56 = vpop.f32.mrb[45].mxu0 }
 0x52a   :  { %v1870_v57 = vpop.f32.mrb[46].mxu0 }
 0x52b   :  { %v1167_v58 = vpack.c.bf16 %v1870_v57, %v1869_v55  ;;  %v1132_v60 = vpop.f32.mrb[47].mxu0  ;;  %1882 = vmatpush3.bf16.msra.mxu1 %v1165_v3 }
 0x52c   :  { %v1166_v63 = vpack.c.bf16 %v1132_v60, %v1129_v56 }
 0x52e   :  { %1883 = vmatprep.subr.bf16.mxu1 %v1166_v63 }
 0x52f   :  { %1884 = vmatpush3.bf16.msra.mxu1 %v1166_v63 }
 0x530   :  { %1885 = vmatprep.subr.bf16.mxu1 %v1167_v58 }
 0x533   :  { %1886 = vmatpush3.bf16.msra.mxu1 %v1167_v58 }
 0x534   :  { %1935 = vmatprep.subr.bf16.mxu1 %v2018_v47 }
 0x536   :  { %1888 = vmatmul.mubr.bf16.vlgmr.msra.gmra.mrb[32].mxu1 %v2011_v6 }
 0x537   :  { %1891 = vmatprep.mubr.bf16.mxu1 %v2012_v7  ;;  %1943 = vmatpush3.bf16.msra.mxu1 %v2018_v47 }
 0x538   :  { %1936 = vmatprep.subr.bf16.mxu1 %v2503_v48 }
 0x53b   :  { %1944 = vmatpush3.bf16.msra.mxu1 %v2503_v48 }
 0x53c   :  { %1937 = vmatprep.subr.bf16.mxu1 %v2506_v39 }
 0x53e   :  { %1892 = vmatmul.mubr.bf16.gmra.mrb[36].mxu1 %v2013_v11 }
 0x53f   :  { %1895 = vmatprep.mubr.bf16.mxu1 %v2014_v18  ;;  %1945 = vmatpush3.bf16.msra.mxu1 %v2506_v39 }
 0x540   :  { %1938 = vmatprep.subr.bf16.mxu1 %v2510_v37 }
 0x543   :  { %1946 = vmatpush3.bf16.msra.mxu1 %v2510_v37 }
 0x544   :  { %1939 = vmatprep.subr.bf16.mxu1 %v2514_v40 }
 0x546   :  { %1896 = vmatmul.mubr.bf16.gmra.mrb[40].mxu1 %v2015_v12 }
 0x547   :  { %1899 = vmatprep.mubr.bf16.mxu1 %v2016_v15  ;;  %1947 = vmatpush3.bf16.msra.mxu1 %v2514_v40 }
 0x548   :  { %1940 = vmatprep.subr.bf16.mxu1 %v2518_v42 }
 0x54b   :  { %1948 = vmatpush3.bf16.msra.mxu1 %v2518_v42 }
 0x54c   :  { %1941 = vmatprep.subr.bf16.mxu1 %v2024_v16 }
 0x54e   :  { %1900 = vmatmul.mubr.bf16.gmra.mrb[44].mxu1 %v2017_v9 }
 0x54f   :  { %1949 = vmatpush3.bf16.msra.mxu1 %v2024_v16 }
 0x550   :  { %1942 = vmatprep.subr.bf16.mxu1 %v2025_v14 }
 0x553   :  { %1950 = vmatpush3.bf16.msra.mxu1 %v2025_v14 }
 0x609   :  { %v1889_v17 = vpop.f32.mrb[32].mxu1 }
 0x60a   :  { %v1257_v10 = vpop.f32.mrb[33].mxu1  ;;  %v1266_v19 = vadd.f32 %v1889_v17, %v1581_v8 }
 0x60b   :  { %v1890_v13 = vpop.f32.mrb[34].mxu1  ;;  %v1258_v22 = vadd.f32 %v1581_v8, %v1257_v10 }
 0x60c   :  { %v1269_v20 = vadd.f32 %v1890_v13, %v1581_v8  ;;  %v1260_v21 = vpop.f32.mrb[35].mxu1 }
 0x60d   :  { %v1261_v24 = vadd.f32 %v1581_v8, %v1260_v21 }
 0x60e   :  { %v1321_v27 = vpack.c.bf16 %v1269_v20, %v1266_v19 }
 0x60f   :  { %v1320_v33 = vpack.c.bf16 %v1261_v24, %v1258_v22 }
 0x611   :  { %v1893_v25 = vpop.f32.mrb[36].mxu1  ;;  %1919 = vmatprep.mubr.bf16.mxu0 %v1320_v33 }
 0x612   :  { %v1273_v32 = vpop.f32.mrb[37].mxu1  ;;  %1920 = vmatmul.mubr.bf16.vlgmr.msra.gmra.mrb[48].mxu0 %v1321_v27  ;;  %v1282_v29 = vadd.f32 %v1893_v25, %v1581_v8 }
 0x613   :  { %v1894_v26 = vpop.f32.mrb[38].mxu1  ;;  %v1274_v28 = vadd.f32 %v1581_v8, %v1273_v32 }
 0x614   :  { %v1285_v23 = vadd.f32 %v1894_v26, %v1581_v8  ;;  %v1276_v30 = vpop.f32.mrb[39].mxu1 }
 0x615   :  { %v1277_v31 = vadd.f32 %v1581_v8, %v1276_v30 }
 0x616   :  { %v1323_v34 = vpack.c.bf16 %v1285_v23, %v1282_v29 }
 0x617   :  { %v1322_v35 = vpack.c.bf16 %v1277_v31, %v1274_v28 }
 0x619   :  { %v1897_v36 = vpop.f32.mrb[40].mxu1  ;;  %1923 = vmatprep.mubr.bf16.mxu0 %v1322_v35 }
 0x61a   :  { %v1289_v38 = vpop.f32.mrb[41].mxu1  ;;  %1924 = vmatmul.mubr.bf16.gmra.mrb[52].mxu0 %v1323_v34  ;;  %v1298_v5 = vadd.f32 %v1897_v36, %v1581_v8 }
 0x61b   :  { %v1898_v41 = vpop.f32.mrb[42].mxu1  ;;  %v1290_v39 = vadd.f32 %v1581_v8, %v1289_v38 }
 0x61c   :  { %v1301_v47 = vadd.f32 %v1898_v41, %v1581_v8  ;;  %v1292_v48 = vpop.f32.mrb[43].mxu1 }
 0x61d   :  { %v1293_v37 = vadd.f32 %v1581_v8, %v1292_v48 }
 0x61e   :  { %v1325_v40 = vpack.c.bf16 %v1301_v47, %v1298_v5 }
 0x61f   :  { %v1324_v42 = vpack.c.bf16 %v1293_v37, %v1290_v39 }
 0x621   :  { %v1901_v43 = vpop.f32.mrb[44].mxu1  ;;  %1927 = vmatprep.mubr.bf16.mxu1 %v1324_v42 }
 0x622   :  { %v1305_v44 = vpop.f32.mrb[45].mxu1  ;;  %1928 = vmatmul.mubr.bf16.vlgmr.msra.gmra.mrb[48].mxu1 %v1325_v40  ;;  %v1314_v46 = vadd.f32 %v1901_v43, %v1581_v8 }
 0x623   :  { %v1902_v45 = vpop.f32.mrb[46].mxu1  ;;  %v1306_v51 = vadd.f32 %v1581_v8, %v1305_v44 }
 0x624   :  { %v1317_v49 = vadd.f32 %v1902_v45, %v1581_v8  ;;  %v1308_v50 = vpop.f32.mrb[47].mxu1 }
 0x625   :  { %v1309_v52 = vadd.f32 %v1581_v8, %v1308_v50 }
 0x626   :  { %v1327_v61 = vpack.c.bf16 %v1317_v49, %v1314_v46 }
 0x627   :  { %v1326_v4 = vpack.c.bf16 %v1309_v52, %v1306_v51 }
 0x629   :  { %1931 = vmatprep.mubr.bf16.mxu1 %v1326_v4 }
 0x62a   :  { %1932 = vmatmul.mubr.bf16.gmra.mrb[52].mxu1 %v1327_v61 }
 0x6e5   :  { %v1921_v1 = vpop.f32.mrb[48].mxu0 }
 0x6e6   :  { %v1442_v59 = vadd.f32 %v1921_v1, %v1590_v62  ;;  %v1433_v2 = vpop.f32.mrb[49].mxu0 }
 0x6e7   :  { %v1434_v0 = vadd.f32 %v1590_v62, %v1433_v2  ;;  %v1922_v3 = vpop.f32.mrb[50].mxu0 }
 0x6e8   :  { %1498 = vst [vmem:[#allocation14 + $0x10] sm:$0xff] %v1442_v59  ;;  %v1445_v53 = vadd.f32 %v1922_v3, %v1590_v62  ;;  %v1436_v54 = vpop.f32.mrb[51].mxu0 }
 0x6e9   :  { %1496 = vst [vmem:[#allocation14] sm:$0xff] %v1434_v0  ;;  %v1437_v55 = vadd.f32 %v1590_v62, %v1436_v54 }
 0x6ea   :  { %1499 = vst [vmem:[#allocation14 + $0x18] sm:$0xff] %v1445_v53 }
 0x6eb   :  { %1497 = vst [vmem:[#allocation14 + $0x8] sm:$0xff] %v1437_v55 }
 0x6ed   :  { %v1925_v56 = vpop.f32.mrb[52].mxu0 }
 0x6ee   :  { %v1458_v57 = vadd.f32 %v1925_v56, %v1590_v62  ;;  %v1449_v58 = vpop.f32.mrb[53].mxu0 }
 0x6ef   :  { %v1450_v60 = vadd.f32 %v1590_v62, %v1449_v58  ;;  %v1926_v63 = vpop.f32.mrb[54].mxu0 }
 0x6f0   :  { %1502 = vst [vmem:[#allocation14 + $0x30] sm:$0xff] %v1458_v57  ;;  %v1461_v6 = vadd.f32 %v1926_v63, %v1590_v62  ;;  %v1452_v7 = vpop.f32.mrb[55].mxu0 }
 0x6f1   :  { %1500 = vst [vmem:[#allocation14 + $0x20] sm:$0xff] %v1450_v60  ;;  %v1453_v11 = vadd.f32 %v1590_v62, %v1452_v7 }
 0x6f2   :  { %1503 = vst [vmem:[#allocation14 + $0x38] sm:$0xff] %v1461_v6 }
 0x6f3   :  { %1501 = vst [vmem:[#allocation14 + $0x28] sm:$0xff] %v1453_v11 }
 0x6f5   :  { %v1929_v18 = vpop.f32.mrb[48].mxu1 }
 0x6f6   :  { %v1474_v12 = vadd.f32 %v1929_v18, %v1590_v62  ;;  %v1465_v15 = vpop.f32.mrb[49].mxu1 }
 0x6f7   :  { %v1466_v9 = vadd.f32 %v1590_v62, %v1465_v15  ;;  %v1930_v16 = vpop.f32.mrb[50].mxu1 }
 0x6f8   :  { %1506 = vst [vmem:[#allocation14 + $0x50] sm:$0xff] %v1474_v12  ;;  %v1477_v14 = vadd.f32 %v1930_v16, %v1590_v62  ;;  %v1468_v17 = vpop.f32.mrb[51].mxu1 }
 0x6f9   :  { %1504 = vst [vmem:[#allocation14 + $0x40] sm:$0xff] %v1466_v9  ;;  %v1469_v8 = vadd.f32 %v1590_v62, %v1468_v17 }
 0x6fa   :  { %1507 = vst [vmem:[#allocation14 + $0x58] sm:$0xff] %v1477_v14 }
 0x6fb   :  { %1505 = vst [vmem:[#allocation14 + $0x48] sm:$0xff] %v1469_v8 }
 0x6fd   :  { %v1933_v10 = vpop.f32.mrb[52].mxu1 }
 0x6fe   :  { %v1490_v13 = vadd.f32 %v1933_v10, %v1590_v62  ;;  %v1481_v19 = vpop.f32.mrb[53].mxu1 }
 0x6ff   :  { %v1482_v20 = vadd.f32 %v1590_v62, %v1481_v19  ;;  %v1934_v21 = vpop.f32.mrb[54].mxu1 }
 0x700   :  { %1510 = vst [vmem:[#allocation14 + $0x70] sm:$0xff] %v1490_v13  ;;  %v1493_v22 = vadd.f32 %v1934_v21, %v1590_v62  ;;  %v1484_v24 = vpop.f32.mrb[55].mxu1 }
 0x701   :  { %1508 = vst [vmem:[#allocation14 + $0x60] sm:$0xff] %v1482_v20  ;;  %v1485_v27 = vadd.f32 %v1590_v62, %v1484_v24 }
 0x702   :  { %1511 = vst [vmem:[#allocation14 + $0x78] sm:$0xff] %v1493_v22 }
 0x703   :  { %1509 = vst [vmem:[#allocation14 + $0x68] sm:$0xff] %v1485_v27 }
 0x704   :  { %2169 = shalt.err (!%p2166_p10)
}
 0x705   :  { %s2170_s4 = scalar_lea.hbm %s2561_s10, 2048 }
 0x706   :  { %p2171_p11 = scmp.ne.s32.totalorder %s2561_s10, %s2170_s4  ;;  %p2174_p12 = scmp.lt.u32.totalorder %s2170_s4, %s2561_s10 }
 0x708   :  { %p2176_p13 = pnand %p2174_p12, %p2171_p11 }
 0x70a   :  { %2179 = shalt.err (!%p2176_p13)
}
 0x70b   :  { %s2199_s22 = smov 128   ;;  %s2200_s15 = smov 8  }
 0x70c   :  { %1523 = dma.vmem_to_hbm [thread:$0]  %s1518_s28, 2048, %s2561_s10, [#allocation5], %s2199_s22, %s2199_s22, %s2200_s15  }
 0x70d   :  { %2188 = dma.done.wait [#allocation5], 2048  }
 0x70e   :  { %2189 = vsyncadd [#allocation5], 4294965248 }
 0x70f   :  { %1527 = vsyncpa [#allocation4], 1 }
 0x710   :  { %1528 = vsyncpa [#allocation7], 1 }
 0x711   :  { %1529 = vsyncpa [#allocation10], 1 }
 0x712   :  { %1530 = vsyncpa [#allocation13], 1 }
 0x713   :  { %1531 = vsyncpa [#allocation5], 1 }

</bundles_post_ra>
